<compile_context>
chip_gen: v6e
topology: v6e:2x2x1
jax: 0.10.0
libtpu: 0.0.40
codegen_flags: <defaults>
</compile_context>

<pallas_src>
import functools

import jax
import jax.numpy as jnp
from jax.experimental import pallas as pl
from jax.experimental.pallas import tpu as pltpu


def _t5_self_attn_kernel(x_ref, lnw_ref, wqkv_ref, wo_ref, o_ref, *,
                         n_heads, d_kv, eps, q_tile):
    S, D = x_ref.shape                     # leading batch dim squeezed by BlockSpec
    inner = n_heads * d_kv
    tq = q_tile
    bf16 = jnp.bfloat16

    # ---- T5LayerNorm (RMS norm), f32 on the VPU ----
    x = x_ref[...].astype(jnp.float32)                       # (S, D)
    var = jnp.mean(x * x, axis=-1, keepdims=True)
    normed = (x * jax.lax.rsqrt(var + eps)) * lnw_ref[0].astype(jnp.float32)

    # ---- fused Q/K/V projection: single bf16 MXU pass over (D, 3*inner) ----
    wqkv = wqkv_ref[...]                                      # (D, 3*inner) bf16
    qkv = jnp.dot(normed.astype(bf16), wqkv,
                  preferred_element_type=jnp.float32)         # (S, 3*inner) f32
    k = qkv[:, inner:2 * inner]                               # (S, inner)
    v = qkv[:, 2 * inner:3 * inner]                           # (S, inner)

    if tq == S:
        q = qkv[:, :inner]                                    # (S, inner)
    else:
        # Query-tiled path: project only this tile's query rows.
        q_start = pl.multiple_of(pl.program_id(1) * tq, tq)
        xq = x_ref[pl.ds(q_start, tq), :].astype(jnp.float32)
        varq = jnp.mean(xq * xq, axis=-1, keepdims=True)
        normq = (xq * jax.lax.rsqrt(varq + eps)) * lnw_ref[0].astype(jnp.float32)
        q = jnp.dot(normq.astype(bf16), wqkv[:, :inner],
                    preferred_element_type=jnp.float32)       # (tq, inner)

    # ---- per-head attention with 2-D matmuls (no 3-D reshape / einsum) ----
    ctx_parts = []
    for h in range(n_heads):                                  # static unroll
        sl = slice(h * d_kv, (h + 1) * d_kv)
        qh = q[:, sl].astype(bf16)                            # (tq, d_kv)
        kh = k[:, sl].astype(bf16)                            # (S,  d_kv)
        vh = v[:, sl].astype(bf16)                            # (S,  d_kv)

        # scores = qh @ kh.T   (T5: NO 1/sqrt(d_kv) scaling, no mask / position bias)
        s = jax.lax.dot_general(qh, kh, (((1,), (1,)), ((), ())),
                                preferred_element_type=jnp.float32)   # (tq, S)

        # softmax over keys (f32); denominator via EUP approx reciprocal
        m = jnp.max(s, axis=-1, keepdims=True)
        p = jnp.exp(s - m)
        denom = jnp.sum(p, axis=-1, keepdims=True)
        attn = p * pl.reciprocal(denom, approx=True)

        ctx_parts.append(jnp.dot(attn.astype(bf16), vh,
                                 preferred_element_type=jnp.float32))  # (tq, d_kv)

    ctx = jnp.concatenate(ctx_parts, axis=-1)                 # (tq, inner) f32

    # ---- output projection; dropout = identity (eval); NO residual (per module) ----
    out = jnp.dot(ctx.astype(bf16), wo_ref[...],
                  preferred_element_type=jnp.float32)         # (tq, D)
    o_ref[...] = out.astype(o_ref.dtype)


def t5_layer_self_attention(x, ln_weight, wq, wk, wv, wo, *, n_heads, d_kv,
                            eps=1e-6, q_tile=None):
    """x: (B, S, D) f32. Weights stored as (in_features, out_features): kernel does x @ W."""
    B, S, D = x.shape
    inner = n_heads * d_kv
    assert wq.shape == (D, inner) and wk.shape == (D, inner)
    assert wv.shape == (D, inner) and wo.shape == (inner, D)

    if q_tile is None:
        q_tile = S if S <= 512 else 512
    assert S % q_tile == 0, "sequence length must be divisible by the query tile"
    if q_tile != S:
        assert q_tile % 8 == 0, "query tile must be sublane-aligned"
    n_q = S // q_tile

    # Fuse + cast weights once, wrapper-side (MXU operands bf16, f32 accumulation).
    wqkv = jnp.concatenate([wq, wk, wv], axis=1).astype(jnp.bfloat16)   # (D, 3*inner)
    wo_b = wo.astype(jnp.bfloat16)                                      # (inner, D)
    lnw = jnp.asarray(ln_weight, jnp.float32).reshape(1, D)

    kernel = functools.partial(_t5_self_attn_kernel, n_heads=n_heads,
                               d_kv=d_kv, eps=eps, q_tile=q_tile)

    return pl.pallas_call(
        kernel,
        out_shape=jax.ShapeDtypeStruct((B, S, D), x.dtype),
        grid_spec=pltpu.PrefetchScalarGridSpec(
            num_scalar_prefetch=0,
            grid=(B, n_q),
            in_specs=[
                pl.BlockSpec((None, S, D), lambda b, qi: (b, 0, 0)),     # x (batch squeezed)
                pl.BlockSpec((1, D), lambda b, qi: (0, 0)),              # layer-norm weight (f32)
                pl.BlockSpec((D, 3 * inner), lambda b, qi: (0, 0)),      # fused Wqkv (bf16)
                pl.BlockSpec((inner, D), lambda b, qi: (0, 0)),          # Wo (bf16)
            ],
            out_specs=pl.BlockSpec((None, q_tile, D), lambda b, qi: (b, qi, 0)),
        ),
        compiler_params=pltpu.CompilerParams(
            dimension_semantics=("parallel", "parallel")),
    )(x, lnw, wqkv, wo_b)


def _reference(x, ln_weight, wq, wk, wv, wo, *, n_heads, d_kv, eps=1e-6):
    # Pure-JAX f32 reference mirroring the PyTorch forward (eval mode, no residual).
    var = jnp.mean(x * x, axis=-1, keepdims=True)
    normed = x * jax.lax.rsqrt(var + eps) * ln_weight
    B, S, D = x.shape
    q = (normed @ wq).reshape(B, S, n_heads, d_kv)
    k = (normed @ wk).reshape(B, S, n_heads, d_kv)
    v = (normed @ wv).reshape(B, S, n_heads, d_kv)
    scores = jnp.einsum('bqhd,bkhd->bhqk', q, k)
    attn = jax.nn.softmax(scores, axis=-1)
    ctx = jnp.einsum('bhqk,bkhd->bqhd', attn, v).reshape(B, S, n_heads * d_kv)
    return ctx @ wo


if __name__ == "__main__":
    # Small T5-style config: d_model=32, num_heads=4, d_kv=8 (inner_dim=32)
    B, S, D = 2, 8, 32
    n_heads, d_kv = 4, 8
    inner = n_heads * d_kv

    key = jax.random.PRNGKey(0)
    kx, kq, kk, kv, ko, kl = jax.random.split(key, 6)

    x = jax.random.normal(kx, (B, S, D), dtype=jnp.float32)
    ln_weight = 1.0 + 0.1 * jax.random.normal(kl, (D,), dtype=jnp.float32)
    wq = 0.1 * jax.random.normal(kq, (D, inner), dtype=jnp.float32)
    wk = 0.1 * jax.random.normal(kk, (D, inner), dtype=jnp.float32)
    wv = 0.1 * jax.random.normal(kv, (D, inner), dtype=jnp.float32)
    wo = 0.1 * jax.random.normal(ko, (inner, D), dtype=jnp.float32)

    out = t5_layer_self_attention(x, ln_weight, wq, wk, wv, wo,
                                  n_heads=n_heads, d_kv=d_kv)
    out = jax.block_until_ready(out)

    ref = _reference(x, ln_weight, wq, wk, wv, wo, n_heads=n_heads, d_kv=d_kv)
    # Tolerance accounts for bf16 MXU operands (f32 accumulation) vs the pure f32 reference.
    assert jnp.allclose(out, ref, atol=5e-2, rtol=5e-2), "mismatch vs reference"

    print("KERNEL_OK")
</pallas_src>

<mosaic_0001>
module attributes {stable_mosaic.version = 11 : i64} {
  func.func @_t5_self_attn_kernel(%arg0: i32, %arg1: i32, %arg2: memref<1x8x32xf32, #tpu.memory_space<vmem>>, %arg3: memref<1x32xf32, #tpu.memory_space<vmem>>, %arg4: memref<32x96xbf16, #tpu.memory_space<vmem>>, %arg5: memref<32x32xbf16, #tpu.memory_space<vmem>>, %arg6: memref<1x8x32xf32, #tpu.memory_space<vmem>>) attributes {dimension_semantics = [#tpu.dimension_semantics<parallel>, #tpu.dimension_semantics<parallel>], iteration_bounds = array<i64: 2, 1>, scalar_prefetch = 0 : i64, scratch_operands = 0 : i64, tpu.core_type = #tpu.core_type<tc>, window_params = [{transform_indices = @transform_0, window_bounds = array<i64: 1, 8, 32>}, {pipeline_mode = #tpu.pipeline_mode<synchronous>, transform_indices = @transform_1, window_bounds = array<i64: 1, 32>}, {pipeline_mode = #tpu.pipeline_mode<synchronous>, transform_indices = @transform_2, window_bounds = array<i64: 32, 96>}, {pipeline_mode = #tpu.pipeline_mode<synchronous>, transform_indices = @transform_3, window_bounds = array<i64: 32, 32>}, {transform_indices = @transform_4, window_bounds = array<i64: 1, 8, 32>}]} {
    %c0 = arith.constant 0 : index
    %c0_0 = arith.constant 0 : index
    %c0_1 = arith.constant 0 : index
    %0 = vector.load %arg2[%c0, %c0_0, %c0_1] : memref<1x8x32xf32, #tpu.memory_space<vmem>>, vector<1x8x32xf32>
    %1 = vector.shape_cast %0 : vector<1x8x32xf32> to vector<8x32xf32>
    %2 = arith.mulf %1, %1 : vector<8x32xf32>
    %cst = arith.constant dense<0.000000e+00> : vector<8xf32>
    %3 = vector.multi_reduction <add>, %2, %cst [1] : vector<8x32xf32> to vector<8xf32>
    %4 = vector.shape_cast %3 : vector<8xf32> to vector<8x1xf32>
    %cst_2 = arith.constant 3.200000e+01 : f32
    %5 = vector.broadcast %cst_2 : f32 to vector<8x1xf32>
    %6 = arith.divf %4, %5 : vector<8x1xf32>
    %cst_3 = arith.constant 9.99999997E-7 : f32
    %7 = vector.broadcast %cst_3 : f32 to vector<8x1xf32>
    %8 = arith.addf %6, %7 : vector<8x1xf32>
    %9 = math.rsqrt %8 : vector<8x1xf32>
    %10 = vector.broadcast %9 : vector<8x1xf32> to vector<8x32xf32>
    %11 = arith.mulf %1, %10 : vector<8x32xf32>
    %c0_4 = arith.constant 0 : index
    %c0_5 = arith.constant 0 : index
    %12 = vector.load %arg3[%c0_4, %c0_5] : memref<1x32xf32, #tpu.memory_space<vmem>>, vector<1x32xf32>
    %13 = vector.shape_cast %12 : vector<1x32xf32> to vector<32xf32>
    %14 = vector.shape_cast %13 : vector<32xf32> to vector<1x32xf32>
    %15 = vector.broadcast %14 : vector<1x32xf32> to vector<8x32xf32>
    %16 = arith.mulf %11, %15 : vector<8x32xf32>
    %c0_6 = arith.constant 0 : index
    %c0_7 = arith.constant 0 : index
    %17 = vector.load %arg4[%c0_6, %c0_7] : memref<32x96xbf16, #tpu.memory_space<vmem>>, vector<32x96xbf16>
    %18 = arith.truncf %16 : vector<8x32xf32> to vector<8x32xbf16>
    %cst_8 = arith.constant dense<0.000000e+00> : vector<8x96xf32>
    %19 = tpu.matmul %18, %17, %cst_8 {dimension_numbers = #tpu.dot_dimension_numbers<[1], [0], [0], [1], [0, 0, 1, 1], [], []>} : vector<8x32xbf16>, vector<32x96xbf16>, vector<8x96xf32> -> vector<8x96xf32>
    %20 = vector.extract_strided_slice %19 {offsets = [0, 32], sizes = [8, 32], strides = [1, 1]} : vector<8x96xf32> to vector<8x32xf32>
    %21 = vector.extract_strided_slice %19 {offsets = [0, 64], sizes = [8, 32], strides = [1, 1]} : vector<8x96xf32> to vector<8x32xf32>
    %22 = vector.extract_strided_slice %19 {offsets = [0, 0], sizes = [8, 32], strides = [1, 1]} : vector<8x96xf32> to vector<8x32xf32>
    %23 = vector.extract_strided_slice %22 {offsets = [0, 0], sizes = [8, 8], strides = [1, 1]} : vector<8x32xf32> to vector<8x8xf32>
    %24 = arith.truncf %23 : vector<8x8xf32> to vector<8x8xbf16>
    %25 = vector.extract_strided_slice %20 {offsets = [0, 0], sizes = [8, 8], strides = [1, 1]} : vector<8x32xf32> to vector<8x8xf32>
    %26 = arith.truncf %25 : vector<8x8xf32> to vector<8x8xbf16>
    %27 = vector.extract_strided_slice %21 {offsets = [0, 0], sizes = [8, 8], strides = [1, 1]} : vector<8x32xf32> to vector<8x8xf32>
    %28 = arith.truncf %27 : vector<8x8xf32> to vector<8x8xbf16>
    %cst_9 = arith.constant dense<0.000000e+00> : vector<8x8xf32>
    %29 = tpu.matmul %24, %26, %cst_9 {dimension_numbers = #tpu.dot_dimension_numbers<[1], [1], [0], [0], [0, 0, 1, 0], [], []>} : vector<8x8xbf16>, vector<8x8xbf16>, vector<8x8xf32> -> vector<8x8xf32>
    %cst_10 = arith.constant dense<0xFF800000> : vector<8xf32>
    %30 = vector.multi_reduction <maximumf>, %29, %cst_10 [1] : vector<8x8xf32> to vector<8xf32>
    %31 = vector.shape_cast %30 : vector<8xf32> to vector<8x1xf32>
    %32 = vector.broadcast %31 : vector<8x1xf32> to vector<8x8xf32>
    %33 = arith.subf %29, %32 : vector<8x8xf32>
    %34 = math.exp %33 : vector<8x8xf32>
    %cst_11 = arith.constant dense<0.000000e+00> : vector<8xf32>
    %35 = vector.multi_reduction <add>, %34, %cst_11 [1] : vector<8x8xf32> to vector<8xf32>
    %36 = vector.shape_cast %35 : vector<8xf32> to vector<8x1xf32>
    %37 = tpu.reciprocal %36 {approx = true} : vector<8x1xf32> -> vector<8x1xf32>
    %38 = vector.broadcast %37 : vector<8x1xf32> to vector<8x8xf32>
    %39 = arith.mulf %34, %38 : vector<8x8xf32>
    %40 = arith.truncf %39 : vector<8x8xf32> to vector<8x8xbf16>
    %cst_12 = arith.constant dense<0.000000e+00> : vector<8x8xf32>
    %41 = tpu.matmul %40, %28, %cst_12 {dimension_numbers = #tpu.dot_dimension_numbers<[1], [0], [0], [1], [0, 0, 1, 1], [], []>} : vector<8x8xbf16>, vector<8x8xbf16>, vector<8x8xf32> -> vector<8x8xf32>
    %42 = vector.extract_strided_slice %22 {offsets = [0, 8], sizes = [8, 8], strides = [1, 1]} : vector<8x32xf32> to vector<8x8xf32>
    %43 = arith.truncf %42 : vector<8x8xf32> to vector<8x8xbf16>
    %44 = vector.extract_strided_slice %20 {offsets = [0, 8], sizes = [8, 8], strides = [1, 1]} : vector<8x32xf32> to vector<8x8xf32>
    %45 = arith.truncf %44 : vector<8x8xf32> to vector<8x8xbf16>
    %46 = vector.extract_strided_slice %21 {offsets = [0, 8], sizes = [8, 8], strides = [1, 1]} : vector<8x32xf32> to vector<8x8xf32>
    %47 = arith.truncf %46 : vector<8x8xf32> to vector<8x8xbf16>
    %cst_13 = arith.constant dense<0.000000e+00> : vector<8x8xf32>
    %48 = tpu.matmul %43, %45, %cst_13 {dimension_numbers = #tpu.dot_dimension_numbers<[1], [1], [0], [0], [0, 0, 1, 0], [], []>} : vector<8x8xbf16>, vector<8x8xbf16>, vector<8x8xf32> -> vector<8x8xf32>
    %cst_14 = arith.constant dense<0xFF800000> : vector<8xf32>
    %49 = vector.multi_reduction <maximumf>, %48, %cst_14 [1] : vector<8x8xf32> to vector<8xf32>
    %50 = vector.shape_cast %49 : vector<8xf32> to vector<8x1xf32>
    %51 = vector.broadcast %50 : vector<8x1xf32> to vector<8x8xf32>
    %52 = arith.subf %48, %51 : vector<8x8xf32>
    %53 = math.exp %52 : vector<8x8xf32>
    %cst_15 = arith.constant dense<0.000000e+00> : vector<8xf32>
    %54 = vector.multi_reduction <add>, %53, %cst_15 [1] : vector<8x8xf32> to vector<8xf32>
    %55 = vector.shape_cast %54 : vector<8xf32> to vector<8x1xf32>
    %56 = tpu.reciprocal %55 {approx = true} : vector<8x1xf32> -> vector<8x1xf32>
    %57 = vector.broadcast %56 : vector<8x1xf32> to vector<8x8xf32>
    %58 = arith.mulf %53, %57 : vector<8x8xf32>
    %59 = arith.truncf %58 : vector<8x8xf32> to vector<8x8xbf16>
    %cst_16 = arith.constant dense<0.000000e+00> : vector<8x8xf32>
    %60 = tpu.matmul %59, %47, %cst_16 {dimension_numbers = #tpu.dot_dimension_numbers<[1], [0], [0], [1], [0, 0, 1, 1], [], []>} : vector<8x8xbf16>, vector<8x8xbf16>, vector<8x8xf32> -> vector<8x8xf32>
    %61 = vector.extract_strided_slice %22 {offsets = [0, 16], sizes = [8, 8], strides = [1, 1]} : vector<8x32xf32> to vector<8x8xf32>
    %62 = arith.truncf %61 : vector<8x8xf32> to vector<8x8xbf16>
    %63 = vector.extract_strided_slice %20 {offsets = [0, 16], sizes = [8, 8], strides = [1, 1]} : vector<8x32xf32> to vector<8x8xf32>
    %64 = arith.truncf %63 : vector<8x8xf32> to vector<8x8xbf16>
    %65 = vector.extract_strided_slice %21 {offsets = [0, 16], sizes = [8, 8], strides = [1, 1]} : vector<8x32xf32> to vector<8x8xf32>
    %66 = arith.truncf %65 : vector<8x8xf32> to vector<8x8xbf16>
    %cst_17 = arith.constant dense<0.000000e+00> : vector<8x8xf32>
    %67 = tpu.matmul %62, %64, %cst_17 {dimension_numbers = #tpu.dot_dimension_numbers<[1], [1], [0], [0], [0, 0, 1, 0], [], []>} : vector<8x8xbf16>, vector<8x8xbf16>, vector<8x8xf32> -> vector<8x8xf32>
    %cst_18 = arith.constant dense<0xFF800000> : vector<8xf32>
    %68 = vector.multi_reduction <maximumf>, %67, %cst_18 [1] : vector<8x8xf32> to vector<8xf32>
    %69 = vector.shape_cast %68 : vector<8xf32> to vector<8x1xf32>
    %70 = vector.broadcast %69 : vector<8x1xf32> to vector<8x8xf32>
    %71 = arith.subf %67, %70 : vector<8x8xf32>
    %72 = math.exp %71 : vector<8x8xf32>
    %cst_19 = arith.constant dense<0.000000e+00> : vector<8xf32>
    %73 = vector.multi_reduction <add>, %72, %cst_19 [1] : vector<8x8xf32> to vector<8xf32>
    %74 = vector.shape_cast %73 : vector<8xf32> to vector<8x1xf32>
    %75 = tpu.reciprocal %74 {approx = true} : vector<8x1xf32> -> vector<8x1xf32>
    %76 = vector.broadcast %75 : vector<8x1xf32> to vector<8x8xf32>
    %77 = arith.mulf %72, %76 : vector<8x8xf32>
    %78 = arith.truncf %77 : vector<8x8xf32> to vector<8x8xbf16>
    %cst_20 = arith.constant dense<0.000000e+00> : vector<8x8xf32>
    %79 = tpu.matmul %78, %66, %cst_20 {dimension_numbers = #tpu.dot_dimension_numbers<[1], [0], [0], [1], [0, 0, 1, 1], [], []>} : vector<8x8xbf16>, vector<8x8xbf16>, vector<8x8xf32> -> vector<8x8xf32>
    %80 = vector.extract_strided_slice %22 {offsets = [0, 24], sizes = [8, 8], strides = [1, 1]} : vector<8x32xf32> to vector<8x8xf32>
    %81 = arith.truncf %80 : vector<8x8xf32> to vector<8x8xbf16>
    %82 = vector.extract_strided_slice %20 {offsets = [0, 24], sizes = [8, 8], strides = [1, 1]} : vector<8x32xf32> to vector<8x8xf32>
    %83 = arith.truncf %82 : vector<8x8xf32> to vector<8x8xbf16>
    %84 = vector.extract_strided_slice %21 {offsets = [0, 24], sizes = [8, 8], strides = [1, 1]} : vector<8x32xf32> to vector<8x8xf32>
    %85 = arith.truncf %84 : vector<8x8xf32> to vector<8x8xbf16>
    %cst_21 = arith.constant dense<0.000000e+00> : vector<8x8xf32>
    %86 = tpu.matmul %81, %83, %cst_21 {dimension_numbers = #tpu.dot_dimension_numbers<[1], [1], [0], [0], [0, 0, 1, 0], [], []>} : vector<8x8xbf16>, vector<8x8xbf16>, vector<8x8xf32> -> vector<8x8xf32>
    %cst_22 = arith.constant dense<0xFF800000> : vector<8xf32>
    %87 = vector.multi_reduction <maximumf>, %86, %cst_22 [1] : vector<8x8xf32> to vector<8xf32>
    %88 = vector.shape_cast %87 : vector<8xf32> to vector<8x1xf32>
    %89 = vector.broadcast %88 : vector<8x1xf32> to vector<8x8xf32>
    %90 = arith.subf %86, %89 : vector<8x8xf32>
    %91 = math.exp %90 : vector<8x8xf32>
    %cst_23 = arith.constant dense<0.000000e+00> : vector<8xf32>
    %92 = vector.multi_reduction <add>, %91, %cst_23 [1] : vector<8x8xf32> to vector<8xf32>
    %93 = vector.shape_cast %92 : vector<8xf32> to vector<8x1xf32>
    %94 = tpu.reciprocal %93 {approx = true} : vector<8x1xf32> -> vector<8x1xf32>
    %95 = vector.broadcast %94 : vector<8x1xf32> to vector<8x8xf32>
    %96 = arith.mulf %91, %95 : vector<8x8xf32>
    %97 = arith.truncf %96 : vector<8x8xf32> to vector<8x8xbf16>
    %cst_24 = arith.constant dense<0.000000e+00> : vector<8x8xf32>
    %98 = tpu.matmul %97, %85, %cst_24 {dimension_numbers = #tpu.dot_dimension_numbers<[1], [0], [0], [1], [0, 0, 1, 1], [], []>} : vector<8x8xbf16>, vector<8x8xbf16>, vector<8x8xf32> -> vector<8x8xf32>
    %99 = tpu.concatenate %41, %60, %79, %98 in 1 : vector<8x8xf32>, vector<8x8xf32>, vector<8x8xf32>, vector<8x8xf32> -> vector<8x32xf32>
    %100 = arith.truncf %99 : vector<8x32xf32> to vector<8x32xbf16>
    %c0_25 = arith.constant 0 : index
    %c0_26 = arith.constant 0 : index
    %101 = vector.load %arg5[%c0_25, %c0_26] : memref<32x32xbf16, #tpu.memory_space<vmem>>, vector<32x32xbf16>
    %cst_27 = arith.constant dense<0.000000e+00> : vector<8x32xf32>
    %102 = tpu.matmul %100, %101, %cst_27 {dimension_numbers = #tpu.dot_dimension_numbers<[1], [0], [0], [1], [0, 0, 1, 1], [], []>} : vector<8x32xbf16>, vector<32x32xbf16>, vector<8x32xf32> -> vector<8x32xf32>
    %c0_28 = arith.constant 0 : index
    %c0_29 = arith.constant 0 : index
    %c0_30 = arith.constant 0 : index
    %103 = vector.load %arg6[%c0_28, %c0_29, %c0_30] : memref<1x8x32xf32, #tpu.memory_space<vmem>>, vector<1x8x32xf32>
    %104 = vector.shape_cast %103 : vector<1x8x32xf32> to vector<8x32xf32>
    %105 = vector.shape_cast %102 : vector<8x32xf32> to vector<1x8x32xf32>
    tpu.vector_store %arg6[%c0_28, %c0_29, %c0_30], %105 {strides = array<i32>} : memref<1x8x32xf32, #tpu.memory_space<vmem>>, vector<1x8x32xf32>,
    return
  }
  func.func @transform_0(%arg0: i32, %arg1: i32) -> (i32, i32, i32) {
    %c0_i32 = arith.constant 0 : i32
    %c0_i32_0 = arith.constant 0 : i32
    %c0_i32_1 = arith.constant 0 : i32
    return %arg0, %c0_i32, %c0_i32_0 : i32, i32, i32
  }
  func.func @transform_1(%arg0: i32, %arg1: i32) -> (i32, i32) {
    %c0_i32 = arith.constant 0 : i32
    %c0_i32_0 = arith.constant 0 : i32
    %c0_i32_1 = arith.constant 0 : i32
    return %c0_i32, %c0_i32_0 : i32, i32
  }
  func.func @transform_2(%arg0: i32, %arg1: i32) -> (i32, i32) {
    %c0_i32 = arith.constant 0 : i32
    %c0_i32_0 = arith.constant 0 : i32
    %c0_i32_1 = arith.constant 0 : i32
    return %c0_i32, %c0_i32_0 : i32, i32
  }
  func.func @transform_3(%arg0: i32, %arg1: i32) -> (i32, i32) {
    %c0_i32 = arith.constant 0 : i32
    %c0_i32_0 = arith.constant 0 : i32
    %c0_i32_1 = arith.constant 0 : i32
    return %c0_i32, %c0_i32_0 : i32, i32
  }
  func.func @transform_4(%arg0: i32, %arg1: i32) -> (i32, i32, i32) {
    %c0_i32 = arith.constant 0 : i32
    %c0_i32_0 = arith.constant 0 : i32
    return %arg0, %arg1, %c0_i32 : i32, i32, i32
  }
}

</mosaic_0001>

<bundles_post_ra>
// kernel: tpu_custom_call.1
= control target key start
LH: loop header
LB: loop body
LE: loop exit
PB: predicated region body
PF: predicated region fallthrough
CT: control target
= control target key end

     0   :  { %9 = vsyncpa [#allocation3], 0  ;;  %s1691_s0 = inlined_call_operand.hbm [shape: f32[2,8,32], index: 0, kind: input, shape index: {}]   ;;  %s1692_s1 = inlined_call_operand.vmem [shape: f32[1,32], index: 1, kind: input, shape index: {}]   ;;  %s1693_s2 = inlined_call_operand.hbm [shape: bf16[32,96], index: 2, kind: input, shape index: {}]   ;;  %s1694_s3 = inlined_call_operand.hbm [shape: bf16[32,32], index: 3, kind: input, shape index: {}]   ;;  %s1695_s4 = inlined_call_operand.hbm [shape: f32[2,8,32], index: 4, kind: output, shape index: {}]  }
   0x1   :  { %11 = vsyncpa [#allocation3 + $0x1], 0 }
   0x2   :  { %12 = vsyncpa [#allocation6], 0 }
   0x3   :  { %13 = vsyncpa [#allocation4], 0 }
   0x4   :  { %15 = vsyncpa [#allocation4 + $0x1], 0  ;;  %s1423_s15 = smov 0   ;;  %s1425_s16 = smov 0  }
   0x5   :  { %s1427_s17 = smov 0   ;;  %s1429_s18 = smov 0  }
   0x6   :  { %s1431_s19 = smov 0   ;;  %s1433_s20 = smov 0  }
   0x7 LB: > { %s969_s21 = sadd.s32 4294967295, %s1374_s20   ;;  %s970_s22 = sadd.s32 4294967294, %s1374_s20   ;;  %s1374_s20 = sphi %s1433_s20, %s21_s20   ;;  %s1370_s19 = sphi %s1431_s19, %s1715_s19   ;;  %s1366_s18 = sphi %s1429_s18, %s1714_s18   ;;  %s1362_s17 = sphi %s1427_s17, %s1713_s17   ;;  %s1358_s16 = sphi %s1425_s16, %s1712_s16   ;;  %s1354_s15 = sphi %s1423_s15, %s1711_s15  }
   0x8   : > { %p53_p0 = scmp.ne.s32.totalorder %s1358_s16, %s1354_s15  ;;  %p1457_p1 = scmp.eq.s32.totalorder %s969_s21, 0 }
   0x9   : > { %p1461_p2 = scmp.eq.s32.totalorder %s969_s21, 1  ;;  %p148_p3 = scmp.eq.s32.totalorder %s970_s22, 1 }
   0xa   : > { %s1699_s23 = scalar_select %p1457_p1, 1, 0 }
   0xb   : > { %p1467_p4 = por %p1457_p1, %p53_p0  ;;  %p971_p5 = scmp.ge.s32.totalorder %s1374_s20, 1 }
   0xc   : > { %p1472_p6 = por %p148_p3, %p53_p0  ;;  %p155_p7 = scmp.lt.s32.totalorder %s1374_s20, 3 }
   0xd   : > { %s1701_s25 = scalar_select %p1467_p4, 1, 0 }
   0xe   : > { %s1702_s26 = scalar_select %p1472_p6, 1, 0 }
   0xf   : > { %p1477_p8 = pnand %p971_p5, %p155_p7  ;;  %s1376_s28 = smov [#allocation5]  }
  0x10   : > { %s170_s29 = sshll.u32 %s1376_s28, 4  ;;  %s1377_s5 = smov [#allocation7]   ;;  %s171_s29 = int_to_ptr.vmem [resolvable:$true] %s170_s29 }
  0x11   : > { %p1099_p9 = pneg %p1477_p8  ;;  %s183_s6 = sshll.u32 %s1377_s5, 4  ;;  %s184_s6 = int_to_ptr.vmem [resolvable:$true] %s183_s6 }
  0x12   : > { %s1221_s7 = scalar_lea.vmem %s171_s29, 256  ;;  %p1229_p5 = scmp.lt.s32.totalorder %s171_s29, %s171_s29 }
  0x13   : > { %p1486_p11 = pnand %p1099_p9, %p1457_p1  ;;  %p1222_p13 = scmp.ne.s32.totalorder %s171_s29, %s1221_s7 }
  0x14   : > { %p1230_p7 = scmp.lt.s32.totalorder %s1221_s7, %s1221_s7 }
  0x15   : > { %p1212_p12 = pneg %p1486_p11 }
  0x16   : > { %p1231_p10 = por %p1230_p7, %p1229_p5 }
  0x17   : > { %p1224_p0 = pnand %p1222_p13, %p1212_p12 }
  0x19   : > { %p1225_p3 = pneg %p1224_p0 }
  0x1b   : > { %p1232_p9 = pnand %p1231_p10, %p1225_p3 }
  0x1d   : > { %1235 = shalt.err (!%p1232_p9)
}
  0x1e   : > { %s1378_s8 = smov 64   ;;  %s1379_s9 = smov 4  }
  0x1f   : > { %1102 = dma.hbm_to_vmem [thread:$0]  (!%p1486_p11), %s1693_s2, 256, %s171_s29, [#allocation6], %s1378_s8, %s1378_s8, %s1379_s9  }
  0x20   : > { %s1247_s12 = scalar_lea.vmem %s184_s6, 256  ;;  %p1255_p1 = scmp.lt.s32.totalorder %s184_s6, %s184_s6 }
  0x21   : > { %p1248_p6 = scmp.ne.s32.totalorder %s184_s6, %s1247_s12  ;;  %p1256_p4 = scmp.lt.s32.totalorder %s1247_s12, %s1247_s12 }
  0x23   : > { %p1250_p13 = pnand %p1248_p6, %p1212_p12  ;;  %p1257_p5 = por %p1256_p4, %p1255_p1 }
  0x25   : > { %p1251_p0 = pneg %p1250_p13 }
  0x27   : > { %p1258_p10 = pnand %p1257_p5, %p1251_p0 }
  0x29   : > { %1261 = shalt.err (!%p1258_p10)
}
  0x2a   : > { %1105 = dma.hbm_to_vmem [thread:$0]  (!%p1486_p11), %s1694_s3, 256, %s184_s6, [#allocation6], %s1378_s8, %s1378_s8, %s1379_s9  }
  0x2b   : > { %s33_s21 = sadd.s32 1, %s1370_s19  ;;  %s40_s22 = sadd.s32 1, %s1362_s17 }
  0x2c   : > { %p35_p1 = scmp.ge.s32.totalorder %s33_s21, 2  ;;  %p47_p4 = scmp.ne.s32.totalorder %s1362_s17, %s1358_s16 }
  0x2d   : > { %p48_p6 = scmp.eq.s32.totalorder %s1374_s20, 0  ;;  %p1116_p12 = scmp.lt.s32.totalorder %s1374_s20, 2 }
  0x2e   : > { %s1717_s21 = smov (%p35_p1, %s33_s21), 0  ;;  %p1518_p7 = por %p1461_p2, %p47_p4 }
  0x2f   : > { %p49_p3 = por %p48_p6, %p47_p4  ;;  %s37_s29 = ssub.s32 %s1370_s19, %s1717_s21 }
  0x30   : > { %s197_s30 = sand.u32 1, %s1362_s17   ;;  %p38_p9 = scmp.eq.s32.totalorder %s37_s29, 0 }
  0x31   : > { %s975_s5 = sshll.u32 %s197_s30, 3  ;;  %s976_s6 = sshll.u32 %s1370_s19, 7 }
  0x32   : > { %s1527_s7 = scalar_select %p38_p9, %s1362_s17, %s40_s22  }
  0x33   : > { %s206_s10 = scalar_lea.hbm %s1691_s0, %s976_s6  ;;  %s201_s11 = scalar_lea.vmem [#allocation2], %s975_s5 }
  0x34   : > { %s208_s12 = sshll.u32 %s201_s11, 4  ;;  %p1534_p11 = pnand %p1116_p12, %p49_p3  ;;  %s209_s12 = int_to_ptr.vmem [resolvable:$true] %s208_s12 }
  0x35   : > { %s198_s13 = scalar_lea.sflag [#allocation3], %s197_s30  ;;  %s1275_s14 = scalar_lea.vmem %s209_s12, 128 }
  0x36   : > { %p1264_p2 = pneg %p1534_p11  ;;  %p1276_p13 = scmp.ne.s32.totalorder %s209_s12, %s1275_s14 }
  0x37   : > { %s1380_s22 = smov [#allocation2]  }
  0x38   : > { %p1278_p0 = pnand %p1276_p13, %p1264_p2  ;;  %s1280_s29 = sshll.u32 %s1380_s22, 4  ;;  %s1281_s29 = int_to_ptr.vmem [resolvable:$false] %s1280_s29 }
  0x39   : > { %s1282_s6 = scalar_lea.vmem %s1281_s29, 256  ;;  %p1283_p10 = scmp.lt.s32.totalorder %s209_s12, %s1281_s29 }
  0x3a   : > { %p1279_p5 = pneg %p1278_p0  ;;  %p1284_p1 = scmp.lt.s32.totalorder %s1282_s6, %s1275_s14 }
  0x3c   : > { %p1285_p4 = por %p1284_p1, %p1283_p10 }
  0x3e   : > { %p1286_p6 = pnand %p1285_p4, %p1279_p5 }
  0x40   : > { %1289 = shalt.err (!%p1286_p6)
}
  0x41   : > { %1109 = dma.hbm_to_vmem [thread:$0]  (!%p1534_p11), %s206_s10, 128, %s209_s12, %s198_s13  }
  0x42   : > { %217 = sbr.rel (%p1477_p8) target bundleno = 1647 (0x66f), region = 36  ;;  %s1545_s30 = sand.u32 (!%p1477_p8), 1, %s1358_s16  }
  0x43   : > { %s978_s5 = sshll.u32 (!%p1477_p8), %s1545_s30, 3  ;;  %s220_s8 = scalar_lea.sflag (!%p1477_p8), [#allocation3], %s1545_s30 }
  0x44   : > { %s223_s9 = scalar_lea.vmem (!%p1477_p8), [#allocation2], %s978_s5  ;;  %p1707_p12 = scmp.ne.s32.totalorder (!%p1477_p8), %s1701_s25, 0 }
  0x47   : > { %1341 = dma.done.wait (%p1707_p12), %s220_s8, 128  }
  0x48   : > { %1343 = vsyncadd (%p1707_p12), %s220_s8, 4294967168  ;;  %p1708_p3 = scmp.ne.s32.totalorder %s1699_s23, 0 }
  0x4a   : > { %1345 = dma.done.wait (%p1708_p3), [#allocation6], 512  }
  0x4b   : > { %1347 = vsyncadd (%p1708_p3), [#allocation6], 4294966784  ;;  %v257_v0 = vld [vmem:[%s223_s9] sm:$0xff]  ;;  %vm259_vm0 = vcmask 261120   ;;  %v1188_v3 = vld [vmem:[#allocation5 + $0x8] sm:$0xff]   ;;  %v1381_v4 = vmov 0.0  }
  0x4c   : > { %v258_v1 = vmul.f32 %v257_v0, %v257_v0  ;;  %1023 = vmatprep.subr.bf16.mxu0 %v1381_v4  ;;  %vm1382_vm1 = vmmov 0   ;;  %v1189_v5 = vld [vmem:[#allocation5] sm:$0xff]   ;;  %1031 = vmatprep.subr.bf16.mxu1 %v1381_v4  ;;  %v982_v10 = vld [vmem:[%s1692_s1] ss:$0 sm:$0xff]  ;;  %s1383_s27 = smov 88   ;;  %s1384_s10 = smov 96  }
  0x4d   : > { %1027 = vmatprep.mubr.msk.bf16.mxu0 %vm1382_vm1, %v1381_v4  ;;  %1024 = vmatpush3.bf16.msra.mxu0 %v1188_v3  ;;  %s1385_s11 = smov 120   ;;  %s1386_s12 = smov 80   ;;  %vm340_vm2 = vcmask 64512   ;;  %vm404_vm3 = vcmask 1043456   ;;  %vm791_vm4 = vcmask 130048   ;;  %vm793_vm5 = vcmask 195584  }
  0x4e   : > { %v260_v2 = vsel %vm259_vm0, %v258_v1, 0.0  ;;  %1025 = vmatprep.subr.bf16.mxu0 %v1381_v4  ;;  %1033 = vmatprep.mubr.msk.bf16.mxu1 %vm1382_vm1, %v1381_v4  ;;  %s1387_s24 = smov 112   ;;  %s1388_s13 = smov 72  }
  0x4f   : > { %261 = vadd.xlane.f32.xlu0 %v260_v2  ;;  %s1389_s14 = smov 104   ;;  %s1390_s22 = smov 56  }
  0x50   : > { %s1391_s29 = smov 64   ;;  %s1392_s6 = smov 40  }
  0x51   : > { %1026 = vmatpush3.bf16.msra.mxu0 %v1189_v5  ;;  %s1393_s8 = smov 48   ;;  %s1394_s9 = smov 8  }
  0x52   : > { %1037 = vmatprep.subr.bf16.mxu0 %v1381_v4  ;;  %s1395_s23 = smov 16   ;;  %s1396_s25 = smov 24  }
  0xd8   : > { %v262_v6 = vpop.xlane.xlu0 %261 }
  0xd9   : > { %v264_v7 = vmul.f32 0.03125, %v262_v6 }
  0xdb   : > { %v265_v8 = vadd.f32 1e-06, %v264_v7 }
  0xdd   : > { %1192 = vrsqrt.f32 %v265_v8 }
  0xea   : > { %v1193_v9 = vpop.eup %1192 }
  0xeb   : > { %v267_v11 = vmul.f32 %v1193_v9, %v257_v0 }
  0xed   : > { %v275_v12 = vmul.f32 %v982_v10, %v267_v11 }
  0xef   : > { %v280_v13 = vpack.c.bf16 %v275_v12, %v275_v12 }
  0xf1   : > { %1028 = vmatmul.mubr.msk.bf16.vlgmr.msra.gmra.mxu0 %vm259_vm0, %v280_v13 }
  0xf2   : > { %1039 = vmatprep.mubr.msk.bf16.mxu0 %vm1382_vm1, %v1381_v4 }
 0x1b1   : > { %v330_v14 = vpop.f32.mrf.mxu0 }
 0x1b2   : > { %v1574_v15 = vpack.c.bf16 %v330_v14, %v330_v14 }
 0x1b3   : > { %v1029_v16 = vpop.f32.mrf.mxu0 }
 0x1b4   : > { %450 = vrot.lane.b32.xlu1 %v1574_v15, %s1383_s27  ;;  %338 = vrot.lane.b32.xlu0 %v1574_v15, %s1384_s10  ;;  %s998_s27 = sshll.u32 %s1366_s18, 7  ;;  %s255_s10 = scalar_lea.vmem [#allocation8], %s978_s5 }
 0x1b5   : > { %v333_v17 = vpop.f32.mrf.mxu0  ;;  %s1397_s18 = smov [#allocation8]  }
 0x1b6   : > { %s1294_s5 = sshll.u32 %s1397_s18, 4  ;;  %s1295_s5 = int_to_ptr.vmem [resolvable:$false] %s1294_s5 }
 0x1b7   : > { %v1030_v18 = vpop.f32.mrf.mxu0 }
 0x1b8   : > { %448 = vrot.lane.b32.xlu1 %v1574_v15, %s1385_s11  ;;  %s871_s11 = sshll.u32 %s255_s10, 4  ;;  %s1644_s11 = int_to_ptr.vmem [resolvable:$true] %s871_s11 }
 0x1b9   : > { %p1297_p2 = scmp.lt.s32.totalorder %s1644_s11, %s1295_s5 }
 0x1bc   : > { %560 = vrot.lane.b32.xlu1 %v1574_v15, %s1386_s12 }
 0x1c0   : > { %558 = vrot.lane.b32.xlu1 %v1574_v15, %s1387_s24 }
 0x1c4   : > { %670 = vrot.lane.b32.xlu1 %v1574_v15, %s1388_s13  ;;  %s1642_s13 = scalar_lea.hbm %s1695_s4, %s998_s27 }
 0x1c8   : > { %668 = vrot.lane.b32.xlu1 %v1574_v15, %s1389_s14  ;;  %s857_s14 = scalar_lea.sflag [#allocation4], %s1545_s30 }
 0x226   : > { %v451_v19 = vpop.permute.xlu1 %450  ;;  %v339_v20 = vpop.permute.xlu0 %338 }
 0x227   : > { %v345_v21 = vsel %vm340_vm2, %v339_v20, 0  ;;  %v456_v23 = vsel %vm340_vm2, %v451_v19, 0 }
 0x228   : > { %1032 = vmatpush3.bf16.xpose.msra.mxu1 %v345_v21 }
 0x229   : > { %1043 = vmatprep.subr.bf16.mxu1 %v1381_v4 }
 0x22a   : > { %v449_v22 = vpop.permute.xlu1 %448 }
 0x22e   : > { %v561_v24 = vpop.permute.xlu1 %560 }
 0x22f   : > { %1034 = vmatmul.mubr.msk.bf16.vlgmr.msra.gmra.mxu1 %vm340_vm2, %v1574_v15  ;;  %v566_v26 = vsel %vm340_vm2, %v561_v24, 0 }
 0x230   : > { %1044 = vmatpush3.bf16.xpose.msra.mxu1 %v456_v23  ;;  %1045 = vmatprep.mubr.msk.bf16.mxu1 %vm1382_vm1, %v1381_v4 }
 0x231   : > { %1055 = vmatprep.subr.bf16.mxu1 %v1381_v4 }
 0x232   : > { %v559_v25 = vpop.permute.xlu1 %558 }
 0x236   : > { %v671_v27 = vpop.permute.xlu1 %670 }
 0x237   : > { %1046 = vmatmul.mubr.msk.bf16.vlgmr.msra.gmra.mxu1 %vm340_vm2, %v449_v22  ;;  %v676_v28 = vsel %vm340_vm2, %v671_v27, 0 }
 0x238   : > { %1056 = vmatpush3.bf16.xpose.msra.mxu1 %v566_v26  ;;  %1057 = vmatprep.mubr.msk.bf16.mxu1 %vm1382_vm1, %v1381_v4 }
 0x239   : > { %1067 = vmatprep.subr.bf16.mxu1 %v1381_v4 }
 0x23a   : > { %v669_v29 = vpop.permute.xlu1 %668 }
 0x23f   : > { %1058 = vmatmul.mubr.msk.bf16.vlgmr.msra.gmra.mxu1 %vm340_vm2, %v559_v25 }
 0x240   : > { %1068 = vmatpush3.bf16.xpose.msra.mxu1 %v676_v28  ;;  %1069 = vmatprep.mubr.msk.bf16.mxu1 %vm1382_vm1, %v1381_v4 }
 0x241   : > { %1079 = vmatprep.subr.bf16.mxu1 %v1381_v4 }
 0x247   : > { %1070 = vmatmul.mubr.msk.bf16.vlgmr.msra.gmra.mxu1 %vm340_vm2, %v669_v29 }
 0x248   : > { %1083 = vmatprep.mubr.msk.bf16.mxu1 %vm1382_vm1, %v1381_v4 }
 0x2ef   : > { %v381_v30 = vpop.f32.mrf.mxu1 }
 0x2f0   : > { %v387_v31 = vsel %vm340_vm2, %v381_v30, -inf }
 0x2f1   : > { %388 = vmax.xlane.f32.xlu1 %v387_v31  ;;  %v1035_v32 = vpop.f32.mrf.mxu1 }
 0x2f3   : > { %v384_v33 = vpop.f32.mrf.mxu1 }
 0x2f5   : > { %v1036_v34 = vpop.f32.mrf.mxu1 }
 0x2f7   : > { %v492_v35 = vpop.f32.mrf.mxu1 }
 0x2f8   : > { %v498_v36 = vsel %vm340_vm2, %v492_v35, -inf }
 0x2f9   : > { %499 = vmax.xlane.f32.xlu0 %v498_v36  ;;  %v1047_v37 = vpop.f32.mrf.mxu1 }
 0x2fb   : > { %v495_v38 = vpop.f32.mrf.mxu1 }
 0x2fd   : > { %v1048_v39 = vpop.f32.mrf.mxu1 }
 0x2fe   : > { %v1190_v39 = vld [vmem:[#allocation7 + $0x8] sm:$0xff]  }
 0x2ff   : > { %v602_v40 = vpop.f32.mrf.mxu1  ;;  %1080 = vmatpush3.bf16.msra.mxu1 %v1190_v39 }
 0x300   : > { %v608_v41 = vsel %vm340_vm2, %v602_v40, -inf  ;;  %1081 = vmatprep.subr.bf16.mxu1 %v1381_v4 }
 0x301   : > { %609 = vmax.xlane.f32.xlu0 %v608_v41  ;;  %v1059_v42 = vpop.f32.mrf.mxu1 }
 0x303   : > { %v605_v43 = vpop.f32.mrf.mxu1 }
 0x305   : > { %v1060_v44 = vpop.f32.mrf.mxu1 }
 0x307   : > { %v712_v45 = vpop.f32.mrf.mxu1 }
 0x308   : > { %v718_v46 = vsel %vm340_vm2, %v712_v45, -inf }
 0x309   : > { %719 = vmax.xlane.f32.xlu1 %v718_v46  ;;  %v1071_v47 = vpop.f32.mrf.mxu1 }
 0x30b   : > { %v715_v48 = vpop.f32.mrf.mxu1 }
 0x30d   : > { %v1072_v49 = vpop.f32.mrf.mxu1 }
 0x37a   : > { %v389_v50 = vpop.xlane.xlu1 %388 }
 0x37b   : > { %v390_v51 = vsub.f32 %v381_v30, %v389_v50 }
 0x37d   : > { %v391_v52 = vmul.f32 1.442695, %v390_v51 }
 0x37f   : > { %1194 = vpow2.f32 %v391_v52 }
 0x382   : > { %v500_v53 = vpop.xlane.xlu0 %499 }
 0x383   : > { %v501_v54 = vsub.f32 %v492_v35, %v500_v53 }
 0x385   : > { %v502_v55 = vmul.f32 1.442695, %v501_v54 }
 0x387   : > { %1196 = vpow2.f32 %v502_v55 }
 0x38a   : > { %v610_v56 = vpop.xlane.xlu0 %609 }
 0x38b   : > { %v611_v57 = vsub.f32 %v602_v40, %v610_v56  ;;  %v1191_v40 = vld [vmem:[#allocation7] sm:$0xff]  }
 0x38c   : > { %v1195_v58 = vpop.eup %1194  ;;  %1082 = vmatpush3.bf16.msra.mxu1 %v1191_v40 }
 0x38d   : > { %v612_v59 = vmul.f32 1.442695, %v611_v57  ;;  %v393_v60 = vsel %vm340_vm2, %v1195_v58, 0.0 }
 0x38e   : > { %394 = vadd.xlane.f32.xlu0 %v393_v60 }
 0x38f   : > { %1198 = vpow2.f32 %v612_v59 }
 0x392   : > { %v720_v1 = vpop.xlane.xlu1 %719 }
 0x393   : > { %v721_v2 = vsub.f32 %v712_v45, %v720_v1 }
 0x394   : > { %v1197_v61 = vpop.eup %1196 }
 0x395   : > { %v504_v62 = vsel %vm340_vm2, %v1197_v61, 0.0  ;;  %v722_v3 = vmul.f32 1.442695, %v721_v2 }
 0x396   : > { %505 = vadd.xlane.f32.xlu1 %v504_v62 }
 0x397   : > { %1200 = vpow2.f32 %v722_v3 }
 0x39c   : > { %v1199_v63 = vpop.eup %1198 }
 0x39d   : > { %v614_v0 = vsel %vm340_vm2, %v1199_v63, 0.0 }
 0x39e   : > { %615 = vadd.xlane.f32.xlu0 %v614_v0 }
 0x3a4   : > { %v1201_v5 = vpop.eup %1200 }
 0x3a5   : > { %v724_v6 = vsel %vm340_vm2, %v1201_v5, 0.0 }
 0x3a7   : > { %510 = vrot.lane.b32.xlu1 %v1574_v15, %s1390_s22  ;;  %s1290_s22 = scalar_lea.vmem %s1644_s11, 128 }
 0x3a8   : > { %p1291_p8 = scmp.ne.s32.totalorder %s1644_s11, %s1290_s22 }
 0x3aa   : > { %p1292_p9 = pnand %p1291_p8, %p1518_p7 }
 0x3ac   : > { %p1293_p11 = pneg %p1292_p9 }
 0x3b4   : > { %399 = vrot.lane.b32.xlu0 %v1574_v15, %s1391_s29  ;;  %s1296_s29 = scalar_lea.vmem %s1295_s5, 256 }
 0x3b5   : > { %p1298_p13 = scmp.lt.s32.totalorder %s1296_s29, %s1290_s22 }
 0x3b7   : > { %p1299_p0 = por %p1298_p13, %p1297_p2 }
 0x3b8   : > { %730 = vrot.lane.b32.xlu0 %v1574_v15, %s1392_s6 }
 0x3b9   : > { %p1300_p5 = pnand %p1299_p0, %p1293_p11 }
 0x3cb   : > { %725 = vadd.xlane.f32.xlu1 %v724_v6 }
 0x3dc   : > { %620 = vrot.lane.b32.xlu1 %v1574_v15, %s1393_s8 }
 0x417   : > { %v395_v7 = vpop.xlane.xlu0 %394 }
 0x418   : > { %1202 = vrcp.f32 %v395_v7 }
 0x41f   : > { %v506_v8 = vpop.xlane.xlu1 %505 }
 0x420   : > { %1204 = vrcp.f32 %v506_v8 }
 0x423   : > { %v511_v14 = vpop.permute.xlu1 %510 }
 0x424   : > { %v516_v18 = vsel %vm404_vm3, %v511_v14, 0 }
 0x425   : > { %v1203_v9 = vpop.eup %1202 }
 0x426   : > { %v397_v11 = vmul.f32 %v1203_v9, %v1195_v58 }
 0x427   : > { %v616_v10 = vpop.xlane.xlu0 %615 }
 0x428   : > { %v398_v16 = vpack.c.bf16 %v397_v11, %v397_v11  ;;  %1206 = vrcp.f32 %v616_v10 }
 0x42b   : > { %v400_v12 = vpop.permute.xlu0 %399 }
 0x42c   : > { %v406_v13 = vsel %vm404_vm3, %v400_v12, 0 }
 0x42d   : > { %1038 = vmatpush3.bf16.msra.mxu0 %v406_v13  ;;  %v1205_v17 = vpop.eup %1204 }
 0x42e   : > { %1049 = vmatprep.subr.bf16.mxu0 %v1381_v4  ;;  %v508_v15 = vmul.f32 %v1205_v17, %v1197_v61 }
 0x42f   : > { %v731_v25 = vpop.permute.xlu0 %730 }
 0x430   : > { %1040 = vmatmul.mubr.msk.bf16.vlgmr.msra.gmra.mxu0 %vm340_vm2, %v398_v16  ;;  %v509_v19 = vpack.c.bf16 %v508_v15, %v508_v15  ;;  %v736_v27 = vsel %vm404_vm3, %v731_v25, 0 }
 0x431   : > { %1050 = vmatpush3.bf16.msra.mxu0 %v516_v18  ;;  %1051 = vmatprep.mubr.msk.bf16.mxu0 %vm1382_vm1, %v1381_v4 }
 0x432   : > { %1061 = vmatprep.subr.bf16.mxu0 %v1381_v4 }
 0x435   : > { %v1207_v20 = vpop.eup %1206 }
 0x436   : > { %v618_v22 = vmul.f32 %v1207_v20, %v1199_v63 }
 0x438   : > { %1052 = vmatmul.mubr.msk.bf16.vlgmr.msra.gmra.mxu0 %vm340_vm2, %v509_v19  ;;  %v619_v26 = vpack.c.bf16 %v618_v22, %v618_v22 }
 0x439   : > { %1063 = vmatprep.mubr.msk.bf16.mxu0 %vm1382_vm1, %v1381_v4 }
 0x454   : > { %v726_v21 = vpop.xlane.xlu1 %725 }
 0x455   : > { %1208 = vrcp.f32 %v726_v21 }
 0x458   : > { %v621_v23 = vpop.permute.xlu1 %620 }
 0x459   : > { %v626_v24 = vsel %vm404_vm3, %v621_v23, 0 }
 0x45a   : > { %1062 = vmatpush3.bf16.msra.mxu0 %v626_v24 }
 0x45b   : > { %1073 = vmatprep.subr.bf16.mxu0 %v1381_v4 }
 0x45d   : > { %1064 = vmatmul.mubr.msk.bf16.vlgmr.msra.gmra.mxu0 %vm340_vm2, %v619_v26 }
 0x45e   : > { %1074 = vmatpush3.bf16.msra.mxu0 %v736_v27  ;;  %1075 = vmatprep.mubr.msk.bf16.mxu0 %vm1382_vm1, %v1381_v4 }
 0x462   : > { %v1209_v28 = vpop.eup %1208 }
 0x463   : > { %v728_v29 = vmul.f32 %v1209_v28, %v1201_v5 }
 0x465   : > { %v729_v30 = vpack.c.bf16 %v728_v29, %v728_v29 }
 0x467   : > { %1076 = vmatmul.mubr.msk.bf16.vlgmr.msra.gmra.mxu0 %vm340_vm2, %v729_v30 }
 0x4f0   : > { %v442_v31 = vpop.f32.mrf.mxu0 }
 0x4f2   : > { %v1041_v32 = vpop.f32.mrf.mxu0 }
 0x4f4   : > { %v445_v33 = vpop.f32.mrf.mxu0 }
 0x4f6   : > { %v1042_v34 = vpop.f32.mrf.mxu0 }
 0x4f8   : > { %v552_v35 = vpop.f32.mrf.mxu0 }
 0x4f9   : > { %779 = vrot.lane.b32.xlu1 %v552_v35, %s1394_s9 }
 0x4fa   : > { %v1053_v36 = vpop.f32.mrf.mxu0 }
 0x4fc   : > { %v555_v37 = vpop.f32.mrf.mxu0 }
 0x4fe   : > { %v1054_v38 = vpop.f32.mrf.mxu0 }
 0x51d   : > { %v662_v41 = vpop.f32.mrf.mxu0 }
 0x51e   : > { %783 = vrot.lane.b32.xlu0 %v662_v41, %s1395_s23 }
 0x51f   : > { %v1065_v42 = vpop.f32.mrf.mxu0 }
 0x521   : > { %v665_v43 = vpop.f32.mrf.mxu0 }
 0x523   : > { %v1066_v44 = vpop.f32.mrf.mxu0 }
 0x527   : > { %v772_v45 = vpop.f32.mrf.mxu0 }
 0x528   : > { %787 = vrot.lane.b32.xlu1 %v772_v45, %s1396_s25 }
 0x529   : > { %v1077_v46 = vpop.f32.mrf.mxu0 }
 0x52b   : > { %v775_v47 = vpop.f32.mrf.mxu0 }
 0x52d   : > { %v1078_v48 = vpop.f32.mrf.mxu0 }
 0x56b   : > { %v780_v49 = vpop.permute.xlu1 %779 }
 0x56c   : > { %v790_v4 = vsel %vm340_vm2, %v442_v31, %v780_v49 }
 0x590   : > { %v784_v50 = vpop.permute.xlu0 %783 }
 0x591   : > { %v792_v51 = vsel %vm791_vm4, %v790_v4, %v784_v50 }
 0x59a   : > { %v788_v52 = vpop.permute.xlu1 %787 }
 0x59b   : > { %v794_v53 = vsel %vm793_vm5, %v792_v51, %v788_v52 }
 0x59c   : > { %v795_v54 = vpack.c.bf16 %v794_v53, %v794_v53 }
 0x59e   : > { %1084 = vmatmul.mubr.msk.bf16.vlgmr.msra.gmra.mxu1 %vm259_vm0, %v795_v54 }
 0x65e   : > { %v849_v55 = vpop.f32.mrf.mxu1 }
 0x65f   : > { %855 = vst.msk [vmem:[%s255_s10] sm:$0xff] %vm259_vm0, %v849_v55 }
 0x660   : > { %v1085_v56 = vpop.f32.mrf.mxu1 }
 0x661   : > { %1303 = shalt.err (!%p1300_p5)
}
 0x662   : > { %s1304_s6 = scalar_lea.hbm %s1642_s13, 128  ;;  %s1308_s9 = scalar_lea.hbm %s1695_s4, 256 }
 0x663   : > { %p1305_p10 = scmp.ne.s32.totalorder %s1642_s13, %s1304_s6  ;;  %p1309_p6 = scmp.lt.s32.totalorder %s1642_s13, %s1695_s4 }
 0x664   : > { %p1310_p12 = scmp.lt.s32.totalorder %s1308_s9, %s1304_s6 }
 0x665   : > { %p1306_p1 = pnand %p1305_p10, %p1518_p7 }
 0x666   : > { %p1311_p3 = por %p1310_p12, %p1309_p6 }
 0x667   : > { %p1307_p4 = pneg %p1306_p1 }
 0x669   : > { %p1312_p8 = pnand %p1311_p3, %p1307_p4 }
 0x66b   : > { %1315 = shalt.err (!%p1312_p8)
}
 0x66c   : > { %1097 = dma.vmem_to_hbm [thread:$0]  (%p1518_p7), %s1644_s11, 128, %s1642_s13, %s857_s14   ;;  %v852_v57 = vpop.f32.mrf.mxu1 }
 0x66e   : > { %v1086_v58 = vpop.f32.mrf.mxu1 }
 0x66f PF: > { %s883_s27 = sand.u32 1, %s1354_s15   ;;  %p1709_p9 = scmp.ne.s32.totalorder %s1702_s26, 0 }
 0x670   : > { %p1710_p11 = scmp.ge.s32.totalorder %s1374_s20, 2  ;;  %s884_s10 = scalar_lea.sflag [#allocation4], %s883_s27 }
 0x672   : > { %p1111_p2 = pnand %p1710_p11, %p1709_p9 }
 0x674   : > { %p1112_p13 = pneg %p1111_p2 }
 0x676   : > { %1349 = dma.done.wait (%p1112_p13), %s884_s10, 128  }
 0x677   : > { %1351 = vsyncadd (%p1112_p13), %s884_s10, 4294967168  ;;  %s21_s20 = sadd.s32 1, %s1374_s20   ;;  %s1711_s15 = smov %s1358_s16 }
 0x678   : > { %p18_p0 = scmp.ge.s32.totalorder %s21_s20, 4   ;;  %s1712_s16 = smov %s1362_s17 }
 0x679   : > { %s1713_s17 = smov %s1527_s7  ;;  %s1714_s18 = smov %s1370_s19 }
 0x67a   : > { %s1715_s19 = smov %s1717_s21  ;;  %20 = sbr.rel (!%p18_p0) target bundleno = 7 (0x7), region = 89 }
 0x67f   :  { %889 = vsyncpa [#allocation3], 1 }
 0x680   :  { %891 = vsyncpa [#allocation3 + $0x1], 1 }
 0x681   :  { %892 = vsyncpa [#allocation6], 1 }
 0x682   :  { %893 = vsyncpa [#allocation4], 1 }
 0x683   :  { %895 = vsyncpa [#allocation4 + $0x1], 1 }

</bundles_post_ra>
